<compile_context>
chip_gen: v5e
topology: v5e:2x2
jax: 0.10.0
libtpu: 0.0.40
codegen_flags: <defaults>
</compile_context>

<pallas_src>
import jax
import jax.numpy as jnp
from jax import lax
from jax.experimental import pallas as pl
from jax.experimental.pallas import tpu as pltpu


def _pick_batch_tile(batch: int) -> int:
    """Largest convenient batch tile that satisfies the (8,128) block constraint."""
    if batch <= 512:
        return batch  # single block == full dim is always legal
    for tb in (512, 256, 128, 64, 32, 16, 8):
        if batch % tb == 0:
            return tb
    # TODO(synk): ragged batch tails would need masked rows; fall back to whole batch.
    return batch


def _make_slot_ce_kernel(num_slots: int, inv_scale: float):
    """inv_scale folds the per-slot 1/B mean and the final 1/num_slots mean."""

    def kernel(labels_ref, *rest):
        logits_refs = rest[:num_slots]
        out_ref = rest[num_slots]

        total = jnp.float32(0.0)
        for s in range(num_slots):
            logits = logits_refs[s][...].astype(jnp.float32)   # (TB, C_s) f32 in vregs
            lab = labels_ref[s]                                # (TB, 1) int32

            tb, c = logits.shape

            # Numerically stable log-softmax pieces.
            row_max = jnp.max(logits, axis=-1, keepdims=True)                  # (TB, 1)
            shifted = logits - row_max                                         # (TB, C)
            lse = jnp.log(jnp.sum(jnp.exp(shifted), axis=-1, keepdims=True))   # (TB, 1)

            # Gather shifted[i, label_i] via one-hot compare (no dynamic vector gather).
            col_ids = lax.broadcasted_iota(jnp.int32, (tb, c), 1)              # (TB, C)
            onehot = col_ids == lab                                            # (TB, C)
            selected = jnp.sum(jnp.where(onehot, shifted, 0.0),
                               axis=-1, keepdims=True)                         # (TB, 1)

            # Reduce to a scalar per slot immediately -> O(1) vreg pressure across slots.
            total = total + jnp.sum(lse - selected)

        # One scale, one scalar store per grid step; partials summed in the wrapper.
        out_ref[0, 0] = total * inv_scale

    return kernel


def slot_linking_criterion(all_logits: dict, labels: dict) -> jax.Array:
    """Pallas equivalent of SlotLinkingCriterion.forward.

    all_logits: dict slot -> (B, C_slot) float logits (any float dtype, kept native)
    labels:     dict slot -> (B,)       int class indices
    Returns scalar f32 loss.
    """
    slot_names = list(all_logits.keys())
    num_slots = len(slot_names)

    # No dtype-cast copies and no stacking of the logits: pass each slot's array as-is.
    logits_list = [all_logits[k] for k in slot_names]
    batch = int(logits_list[0].shape[0])
    for x in logits_list:
        assert int(x.shape[0]) == batch, "all slots must share the same batch size"

    # Labels are tiny: pack them into ONE (S, B, 1) int32 input -> a single DMA.
    labels_stacked = jnp.stack(
        [labels[k].astype(jnp.int32).reshape(batch) for k in slot_names], axis=0
    ).reshape(num_slots, batch, 1)

    tb = _pick_batch_tile(batch)
    num_blocks = batch // tb

    inv_scale = 1.0 / float(num_slots * batch)

    in_specs = [pl.BlockSpec((num_slots, tb, 1), lambda i: (0, i, 0))]
    in_specs += [
        pl.BlockSpec((tb, int(x.shape[1])), lambda i: (i, 0)) for x in logits_list
    ]
    # One (1,1) partial sum per grid block; SMEM scalar store is the cheap path.
    out_specs = pl.BlockSpec((1, 1), lambda i: (i, 0),
                             memory_space=pltpu.MemorySpace.SMEM)

    per_step_bytes = sum(tb * int(x.shape[1]) * x.dtype.itemsize for x in logits_list)
    per_step_bytes += num_slots * tb * 4
    # 4x margin covers double-buffering; cap well under v7x's 64 MiB physical VMEM.
    vmem_bytes = int(min(48 * 1024 * 1024, max(8 * 1024 * 1024, 4 * per_step_bytes)))

    total_logit_elems = sum(int(x.size) for x in logits_list)
    in_bytes = (sum(int(x.size) * x.dtype.itemsize for x in logits_list)
                + num_slots * batch * 4)

    partials = pl.pallas_call(
        _make_slot_ce_kernel(num_slots, inv_scale),
        out_shape=jax.ShapeDtypeStruct((num_blocks, 1), jnp.float32),
        grid=(num_blocks,),
        in_specs=in_specs,
        out_specs=out_specs,
        compiler_params=pltpu.CompilerParams(
            dimension_semantics=("parallel",),   # shards batch tiles across v7x's 2 TCs
            vmem_limit_bytes=vmem_bytes,
        ),
        cost_estimate=pl.CostEstimate(
            flops=5 * total_logit_elems,
            transcendentals=total_logit_elems + num_slots * batch,
            bytes_accessed=in_bytes + 4 * num_blocks,
        ),
    )(labels_stacked, *logits_list)

    # Tiny final reduction over per-block partial sums (scale already folded in-kernel).
    return jnp.sum(partials)


def _reference_loss(all_logits: dict, labels: dict) -> jax.Array:
    """Pure-JAX reference mirroring torch's CrossEntropyLoss (mean reduction)."""
    total = 0.0
    for k in all_logits:
        lg = all_logits[k].astype(jnp.float32)
        lb = labels[k].astype(jnp.int32)
        logp = jax.nn.log_softmax(lg, axis=-1)
        nll = -jnp.take_along_axis(logp, lb[:, None], axis=-1)[:, 0]
        total = total + jnp.mean(nll)
    return total / len(all_logits)


if __name__ == "__main__":
    key = jax.random.PRNGKey(0)
    batch = 8
    # Different class counts per slot to exercise the general (per-slot C) path.
    slot_classes = {"slot_0": 32, "slot_1": 16, "slot_2": 48}

    all_logits = {}
    labels = {}
    for name, c in slot_classes.items():
        key, k1, k2 = jax.random.split(key, 3)
        all_logits[name] = jax.random.normal(k1, (batch, c), dtype=jnp.float32)
        labels[name] = jax.random.randint(k2, (batch,), 0, c, dtype=jnp.int32)

    loss = slot_linking_criterion(all_logits, labels)
    jax.block_until_ready(loss)

    ref = _reference_loss(all_logits, labels)
    assert jnp.allclose(loss, ref, atol=1e-5, rtol=1e-5), (loss, ref)

    print("KERNEL_OK")
</pallas_src>

<mosaic_0001>
module attributes {stable_mosaic.version = 11 : i64} {
  func.func @kernel(%arg0: i32, %arg1: memref<3x8x1xi32, #tpu.memory_space<vmem>>, %arg2: memref<8x32xf32, #tpu.memory_space<vmem>>, %arg3: memref<8x16xf32, #tpu.memory_space<vmem>>, %arg4: memref<8x48xf32, #tpu.memory_space<vmem>>, %arg5: memref<1x1xf32, #tpu.memory_space<smem>>) attributes {dimension_semantics = [#tpu.dimension_semantics<parallel>], iteration_bounds = array<i64: 1>, scalar_prefetch = 0 : i64, scratch_operands = 0 : i64, tpu.core_type = #tpu.core_type<tc>, window_params = [{transform_indices = @transform_0, window_bounds = array<i64: 3, 8, 1>}, {transform_indices = @transform_1, window_bounds = array<i64: 8, 32>}, {transform_indices = @transform_2, window_bounds = array<i64: 8, 16>}, {transform_indices = @transform_3, window_bounds = array<i64: 8, 48>}, {transform_indices = @transform_4, window_bounds = array<i64: 1, 1>}]} {
    %c0 = arith.constant 0 : index
    %c0_0 = arith.constant 0 : index
    %0 = vector.load %arg2[%c0, %c0_0] : memref<8x32xf32, #tpu.memory_space<vmem>>, vector<8x32xf32>
    %c0_1 = arith.constant 0 : index
    %c0_2 = arith.constant 0 : index
    %c0_3 = arith.constant 0 : index
    %1 = vector.load %arg1[%c0_1, %c0_2, %c0_3] : memref<3x8x1xi32, #tpu.memory_space<vmem>>, vector<1x8x1xi32>
    %2 = vector.shape_cast %1 : vector<1x8x1xi32> to vector<8x1xi32>
    %cst = arith.constant dense<0xFF800000> : vector<8xf32>
    %3 = vector.multi_reduction <maximumf>, %0, %cst [1] : vector<8x32xf32> to vector<8xf32>
    %4 = vector.shape_cast %3 : vector<8xf32> to vector<8x1xf32>
    %5 = vector.broadcast %4 : vector<8x1xf32> to vector<8x32xf32>
    %6 = arith.subf %0, %5 : vector<8x32xf32>
    %7 = math.exp %6 : vector<8x32xf32>
    %cst_4 = arith.constant dense<0.000000e+00> : vector<8xf32>
    %8 = vector.multi_reduction <add>, %7, %cst_4 [1] : vector<8x32xf32> to vector<8xf32>
    %9 = vector.shape_cast %8 : vector<8xf32> to vector<8x1xf32>
    %10 = math.log %9 : vector<8x1xf32>
    %11 = tpu.iota {dimensions = array<i32: 1>} : vector<8x32xi32>
    %12 = vector.broadcast %2 : vector<8x1xi32> to vector<8x32xi32>
    %13 = arith.cmpi eq, %11, %12 : vector<8x32xi32>
    %cst_5 = arith.constant 0.000000e+00 : f32
    %14 = vector.broadcast %cst_5 : f32 to vector<8x32xf32>
    %15 = arith.select %13, %6, %14 : vector<8x32xi1>, vector<8x32xf32>
    %cst_6 = arith.constant dense<0.000000e+00> : vector<8xf32>
    %16 = vector.multi_reduction <add>, %15, %cst_6 [1] : vector<8x32xf32> to vector<8xf32>
    %17 = vector.shape_cast %16 : vector<8xf32> to vector<8x1xf32>
    %18 = arith.subf %10, %17 : vector<8x1xf32>
    %19 = vector.shape_cast %18 : vector<8x1xf32> to vector<1x8x1xf32>
    %cst_7 = arith.constant dense<0.000000e+00> : vector<1xf32>
    %20 = vector.multi_reduction <add>, %19, %cst_7 [1, 2] : vector<1x8x1xf32> to vector<1xf32>
    %21 = vector.shape_cast %20 : vector<1xf32> to vector<1x1x1xf32>
    %22 = vector.extract %21[0, 0, 0] : f32 from vector<1x1x1xf32>
    %cst_8 = arith.constant 0.000000e+00 : f32
    %23 = arith.addf %cst_8, %22 : f32
    %c0_9 = arith.constant 0 : index
    %c0_10 = arith.constant 0 : index
    %24 = vector.load %arg3[%c0_9, %c0_10] : memref<8x16xf32, #tpu.memory_space<vmem>>, vector<8x16xf32>
    %c1 = arith.constant 1 : index
    %c0_11 = arith.constant 0 : index
    %c0_12 = arith.constant 0 : index
    %25 = vector.load %arg1[%c1, %c0_11, %c0_12] : memref<3x8x1xi32, #tpu.memory_space<vmem>>, vector<1x8x1xi32>
    %26 = vector.shape_cast %25 : vector<1x8x1xi32> to vector<8x1xi32>
    %cst_13 = arith.constant dense<0xFF800000> : vector<8xf32>
    %27 = vector.multi_reduction <maximumf>, %24, %cst_13 [1] : vector<8x16xf32> to vector<8xf32>
    %28 = vector.shape_cast %27 : vector<8xf32> to vector<8x1xf32>
    %29 = vector.broadcast %28 : vector<8x1xf32> to vector<8x16xf32>
    %30 = arith.subf %24, %29 : vector<8x16xf32>
    %31 = math.exp %30 : vector<8x16xf32>
    %cst_14 = arith.constant dense<0.000000e+00> : vector<8xf32>
    %32 = vector.multi_reduction <add>, %31, %cst_14 [1] : vector<8x16xf32> to vector<8xf32>
    %33 = vector.shape_cast %32 : vector<8xf32> to vector<8x1xf32>
    %34 = math.log %33 : vector<8x1xf32>
    %35 = tpu.iota {dimensions = array<i32: 1>} : vector<8x16xi32>
    %36 = vector.broadcast %26 : vector<8x1xi32> to vector<8x16xi32>
    %37 = arith.cmpi eq, %35, %36 : vector<8x16xi32>
    %cst_15 = arith.constant 0.000000e+00 : f32
    %38 = vector.broadcast %cst_15 : f32 to vector<8x16xf32>
    %39 = arith.select %37, %30, %38 : vector<8x16xi1>, vector<8x16xf32>
    %cst_16 = arith.constant dense<0.000000e+00> : vector<8xf32>
    %40 = vector.multi_reduction <add>, %39, %cst_16 [1] : vector<8x16xf32> to vector<8xf32>
    %41 = vector.shape_cast %40 : vector<8xf32> to vector<8x1xf32>
    %42 = arith.subf %34, %41 : vector<8x1xf32>
    %43 = vector.shape_cast %42 : vector<8x1xf32> to vector<1x8x1xf32>
    %cst_17 = arith.constant dense<0.000000e+00> : vector<1xf32>
    %44 = vector.multi_reduction <add>, %43, %cst_17 [1, 2] : vector<1x8x1xf32> to vector<1xf32>
    %45 = vector.shape_cast %44 : vector<1xf32> to vector<1x1x1xf32>
    %46 = vector.extract %45[0, 0, 0] : f32 from vector<1x1x1xf32>
    %47 = arith.addf %23, %46 : f32
    %c0_18 = arith.constant 0 : index
    %c0_19 = arith.constant 0 : index
    %48 = vector.load %arg4[%c0_18, %c0_19] : memref<8x48xf32, #tpu.memory_space<vmem>>, vector<8x48xf32>
    %c2 = arith.constant 2 : index
    %c0_20 = arith.constant 0 : index
    %c0_21 = arith.constant 0 : index
    %49 = vector.load %arg1[%c2, %c0_20, %c0_21] : memref<3x8x1xi32, #tpu.memory_space<vmem>>, vector<1x8x1xi32>
    %50 = vector.shape_cast %49 : vector<1x8x1xi32> to vector<8x1xi32>
    %cst_22 = arith.constant dense<0xFF800000> : vector<8xf32>
    %51 = vector.multi_reduction <maximumf>, %48, %cst_22 [1] : vector<8x48xf32> to vector<8xf32>
    %52 = vector.shape_cast %51 : vector<8xf32> to vector<8x1xf32>
    %53 = vector.broadcast %52 : vector<8x1xf32> to vector<8x48xf32>
    %54 = arith.subf %48, %53 : vector<8x48xf32>
    %55 = math.exp %54 : vector<8x48xf32>
    %cst_23 = arith.constant dense<0.000000e+00> : vector<8xf32>
    %56 = vector.multi_reduction <add>, %55, %cst_23 [1] : vector<8x48xf32> to vector<8xf32>
    %57 = vector.shape_cast %56 : vector<8xf32> to vector<8x1xf32>
    %58 = math.log %57 : vector<8x1xf32>
    %59 = tpu.iota {dimensions = array<i32: 1>} : vector<8x48xi32>
    %60 = vector.broadcast %50 : vector<8x1xi32> to vector<8x48xi32>
    %61 = arith.cmpi eq, %59, %60 : vector<8x48xi32>
    %cst_24 = arith.constant 0.000000e+00 : f32
    %62 = vector.broadcast %cst_24 : f32 to vector<8x48xf32>
    %63 = arith.select %61, %54, %62 : vector<8x48xi1>, vector<8x48xf32>
    %cst_25 = arith.constant dense<0.000000e+00> : vector<8xf32>
    %64 = vector.multi_reduction <add>, %63, %cst_25 [1] : vector<8x48xf32> to vector<8xf32>
    %65 = vector.shape_cast %64 : vector<8xf32> to vector<8x1xf32>
    %66 = arith.subf %58, %65 : vector<8x1xf32>
    %67 = vector.shape_cast %66 : vector<8x1xf32> to vector<1x8x1xf32>
    %cst_26 = arith.constant dense<0.000000e+00> : vector<1xf32>
    %68 = vector.multi_reduction <add>, %67, %cst_26 [1, 2] : vector<1x8x1xf32> to vector<1xf32>
    %69 = vector.shape_cast %68 : vector<1xf32> to vector<1x1x1xf32>
    %70 = vector.extract %69[0, 0, 0] : f32 from vector<1x1x1xf32>
    %71 = arith.addf %47, %70 : f32
    %cst_27 = arith.constant 0.0416666679 : f32
    %72 = arith.mulf %71, %cst_27 : f32
    %c0_28 = arith.constant 0 : index
    %c0_29 = arith.constant 0 : index
    %73 = memref.load %arg5[%c0_28, %c0_29] : memref<1x1xf32, #tpu.memory_space<smem>>
    memref.store %72, %arg5[%c0_28, %c0_29] : memref<1x1xf32, #tpu.memory_space<smem>>
    return
  }
  func.func @transform_0(%arg0: i32) -> (i32, i32, i32) {
    %c0_i32 = arith.constant 0 : i32
    %c0_i32_0 = arith.constant 0 : i32
    %c0_i32_1 = arith.constant 0 : i32
    return %c0_i32, %arg0, %c0_i32_0 : i32, i32, i32
  }
  func.func @transform_1(%arg0: i32) -> (i32, i32) {
    %c0_i32 = arith.constant 0 : i32
    %c0_i32_0 = arith.constant 0 : i32
    return %arg0, %c0_i32 : i32, i32
  }
  func.func @transform_2(%arg0: i32) -> (i32, i32) {
    %c0_i32 = arith.constant 0 : i32
    %c0_i32_0 = arith.constant 0 : i32
    return %arg0, %c0_i32 : i32, i32
  }
  func.func @transform_3(%arg0: i32) -> (i32, i32) {
    %c0_i32 = arith.constant 0 : i32
    %c0_i32_0 = arith.constant 0 : i32
    return %arg0, %c0_i32 : i32, i32
  }
  func.func @transform_4(%arg0: i32) -> (i32, i32) {
    %c0_i32 = arith.constant 0 : i32
    %c0_i32_0 = arith.constant 0 : i32
    return %arg0, %c0_i32 : i32, i32
  }
}

</mosaic_0001>

<bundles_post_ra>
// kernel: tpu_custom_call.1
= control target key start
LH: loop header
LB: loop body
LE: loop exit
PB: predicated region body
PF: predicated region fallthrough
CT: control target
= control target key end

     0   :  { %vm93_vm0 = vcmask 392192   ;;  %vm20_vm1 = vcmask 261120   ;;  %s239_s0 = inlined_call_operand.vmem [shape: s32[3,8,1], index: 0, kind: input, shape index: {}]   ;;  %s240_s1 = inlined_call_operand.vmem [shape: f32[8,32], index: 1, kind: input, shape index: {}]   ;;  %s241_s2 = inlined_call_operand.vmem [shape: f32[8,16], index: 2, kind: input, shape index: {}]   ;;  %s242_s3 = inlined_call_operand.vmem [shape: f32[8,48], index: 3, kind: input, shape index: {}]   ;;  %s243_s4 = inlined_call_operand.hbm [shape: f32[1,1], index: 4, kind: output, shape index: {}]  }
   0x1   :  { %v90_v0 = vld [vmem:[%s242_s3] sm:$0xff]  ;;  %v143_v4 = vld [vmem:[%s239_s0 + $0x8] sm:$0xff] }
   0x2   :  { %v18_v1 = vld [vmem:[%s240_s1] sm:$0xff]  ;;  %v94_v2 = vsel %vm93_vm0, %v90_v0, -inf }
   0x3   :  { %v21_v3 = vsel %vm20_vm1, %v18_v1, -inf  ;;  %95 = vmax.xlane.f32.xlu1 %v94_v2 }
   0x4   :  { %22 = vmax.xlane.f32.xlu0 %v21_v3 }
   0x5   :  { %9 = vsyncpa [#allocation3], 0  ;;  %v182_v5 = vmov 0   ;;  %v55_v6 = vld [vmem:[%s241_s2] sm:$0xff]  ;;  %vm58_vm2 = vcmask 130048   ;;  %v144_v8 = vld [vmem:[%s239_s0 + $0x10] sm:$0xff]  ;;  %v32_v13 = vlaneseq }
   0x6   :  { %154 = vset.pattern.permute.xlu2 %v182_v5  ;;  %153 = vset.pattern.permute.xlu1 %v182_v5  ;;  %v59_v7 = vsel %vm58_vm2, %v55_v6, -inf  ;;  %v19_v9 = vld [vmem:[%s239_s0] sm:$0xff]  ;;  %vm43_vm6 = vcmask 7168   ;;  %s133_s29 = sshll.u32 %s243_s4, 4  ;;  %s183_s6 = smov [#allocation2]   ;;  %s134_s29 = int_to_ptr.hbm [resolvable:$true] %s133_s29 }
   0x7   :  { %71 = vperm.xlu2 %154, %v143_v4   ;;  %155 = vset.pattern.permute.xlu0 %v182_v5  ;;  %v33_v16 = vand.u32 127, %v32_v13 }
   0xc   :  { %60 = vmax.xlane.f32.xlu0 %v59_v7 }
   0xf   :  { %106 = vperm.xlu2 %154, %v144_v8  }
  0x1c   :  { %35 = vperm.xlu1 %153, %v19_v9  }
  0x61   :  { %v72_v17 = vpop.permute.xlu2 %71 }
  0x62   :  { %vm73_vm3 = vcmp.eq.s32.totalorder %v33_v16, %v72_v17 }
  0x69   :  { %v107_v32 = vpop.permute.xlu2 %106 }
  0x6a   :  { %vm108_vm5 = vcmp.eq.s32.totalorder %v33_v16, %v107_v32 }
  0x76   :  { %v96_v11 = vpop.xlane.xlu1 %95 }
  0x77   :  { %v23_v10 = vpop.xlane.xlu0 %22  ;;  %v97_v15 = vsub.f32 %v90_v0, %v96_v11 }
  0x78   :  { %v24_v12 = vsub.f32 %v18_v1, %v23_v10 }
  0x79   :  { %v98_v18 = vmul.f32 1.442695, %v97_v15  ;;  %v109_v34 = vsel %vm108_vm5, %v97_v15, 0.0 }
  0x7a   :  { %v25_v14 = vmul.f32 1.442695, %v24_v12  ;;  %v110_v35 = vsel %vm93_vm0, %v109_v34, 0.0 }
  0x7c   :  { %156 = vpow2.f32 %v25_v14 }
  0x7d   :  { %158 = vpow2.f32 %v98_v18 }
  0x7f   :  { %v61_v19 = vpop.xlane.xlu0 %60 }
  0x80   :  { %v62_v20 = vsub.f32 %v55_v6, %v61_v19 }
  0x82   :  { %v157_v21 = vpop.eup %156  ;;  %v63_v22 = vmul.f32 1.442695, %v62_v20  ;;  %v74_v23 = vsel %vm73_vm3, %v62_v20, 0.0 }
  0x83   :  { %v27_v24 = vsel %vm20_vm1, %v157_v21, 0.0  ;;  %v75_v25 = vsel %vm58_vm2, %v74_v23, 0.0  ;;  %v159_v26 = vpop.eup %158 }
  0x84   :  { %160 = vpow2.f32 %v63_v22  ;;  %28 = vadd.xlane.f32.xlu0 %v27_v24  ;;  %76 = vadd.xlane.f32.xlu1 %v75_v25  ;;  %v100_v28 = vsel %vm93_vm0, %v159_v26, 0.0 }
  0x8a   :  { %v161_v27 = vpop.eup %160 }
  0x8b   :  { %v65_v29 = vsel %vm58_vm2, %v161_v27, 0.0 }
  0x8c   :  { %101 = vadd.xlane.f32.xlu0 %v100_v28  ;;  %66 = vadd.xlane.f32.xlu2 %v65_v29 }
  0x8e   :  { %v36_v30 = vpop.permute.xlu1 %35 }
  0x8f   :  { %vm37_vm4 = vcmp.eq.s32.totalorder %v33_v16, %v36_v30 }
  0x90   :  { %v38_v31 = vsel %vm37_vm4, %v24_v12, 0.0 }
  0x91   :  { %v39_v33 = vsel %vm20_vm1, %v38_v31, 0.0 }
  0x94   :  { %40 = vadd.xlane.f32.xlu0 %v39_v33 }
  0x9c   :  { %111 = vadd.xlane.f32.xlu0 %v110_v35 }
  0xf7   :  { %v29_v36 = vpop.xlane.xlu0 %28  ;;  %v77_v47 = vpop.xlane.xlu1 %76 }
  0xf8   :  { %162 = vlog2.f32 %v29_v36 }
  0xfe   :  { %v163_v39 = vpop.eup %162 }
  0xff   :  { %v67_v37 = vpop.xlane.xlu2 %66  ;;  %v102_v38 = vpop.xlane.xlu0 %101  ;;  %v31_v40 = vmul.f32 0.6931472, %v163_v39 }
 0x100   :  { %164 = vlog2.f32 %v67_v37 }
 0x101   :  { %166 = vlog2.f32 %v102_v38 }
 0x106   :  { %v165_v41 = vpop.eup %164 }
 0x107   :  { %v41_v42 = vpop.xlane.xlu0 %40  ;;  %v69_v44 = vmul.f32 0.6931472, %v165_v41  ;;  %v167_v46 = vpop.eup %166 }
 0x108   :  { %v42_v43 = vsub.f32 %v31_v40, %v41_v42  ;;  %v104_v48 = vmul.f32 0.6931472, %v167_v46 }
 0x109   :  { %v78_v49 = vsub.f32 %v69_v44, %v77_v47 }
 0x10a   :  { %v44_v45 = vsel %vm43_vm6, %v42_v43, 0.0 }
 0x10b   :  { %45 = vadd.xlane.f32.xlu0 %v44_v45  ;;  %v79_v52 = vsel %vm43_vm6, %v78_v49, 0.0 }
 0x10f   :  { %v112_v50 = vpop.xlane.xlu0 %111 }
 0x110   :  { %v113_v51 = vsub.f32 %v104_v48, %v112_v50 }
 0x112   :  { %v114_v53 = vsel %vm43_vm6, %v113_v51, 0.0 }
 0x113   :  { %80 = vadd.xlane.f32.xlu0 %v79_v52  ;;  %115 = vadd.xlane.f32.xlu2 %v114_v53 }
 0x17e   :  { %v46_v54 = vpop.xlane.xlu0 %45 }
 0x17f   :  { %v47_v55 = vrot.slane %v46_v54, 4 }
 0x181   :  { %v48_v56 = vadd.f32 %v47_v55, %v46_v54 }
 0x183   :  { %v49_v57 = vrot.slane %v48_v56, 2 }
 0x185   :  { %v50_v58 = vadd.f32 %v49_v57, %v48_v56 }
 0x186   :  { %v116_v59 = vpop.xlane.xlu2 %115  ;;  %v81_v60 = vpop.xlane.xlu0 %80 }
 0x187   :  { %v117_v61 = vrot.slane %v116_v59, 4  ;;  %v82_v62 = vrot.slane %v81_v60, 4  ;;  %v51_v63 = vrot.slane %v50_v58, 1 }
 0x189   :  { %v118_v0 = vadd.f32 %v117_v61, %v116_v59  ;;  %v83_v1 = vadd.f32 %v82_v62, %v81_v60  ;;  %v52_v2 = vadd.f32 %v51_v63, %v50_v58 }
 0x18b   :  { %v119_v3 = vrot.slane %v118_v0, 2  ;;  %v84_v4 = vrot.slane %v83_v1, 2  ;;  %145 = vpush %v52_v2 }
 0x18d   :  { %v120_v5 = vadd.f32 %v119_v3, %v118_v0  ;;  %v85_v6 = vadd.f32 %v84_v4, %v83_v1 }
 0x18f   :  { %v86_v7 = vrot.slane %v85_v6, 1  ;;  %v121_v8 = vrot.slane %v120_v5, 1 }
 0x191   :  { %v87_v9 = vadd.f32 %v86_v7, %v85_v6  ;;  %v122_v10 = vadd.f32 %v121_v8, %v120_v5 }
 0x193   :  { %147 = vpush %v87_v9 }
 0x194   :  { %149 = vpush %v122_v10 }
 0x1bc   :  { %s146_s0 = spop %145 }
 0x1c4   :  { %s148_s2 = spop %147 }
 0x1c5   :  { %s89_s25 = sadd.f32 %s148_s2, %s146_s0  ;;  %s150_s26 = spop %149 }
 0x1c7   :  { %s124_s30 = sadd.f32 %s150_s26, %s89_s25 }
 0x1c9   :  { %s125_s5 = smul.f32 0.041666668, %s124_s30 }
 0x1cb   :  { %127 = sst [smem:[#allocation2]] %s125_s5 }
 0x1cc   :  { %136 = dma.smem_to_hbm %s183_s6, 16, %s134_s29, [#allocation3]  }
 0x1cd   :  { %180 = dma.done.wait [#allocation3], 16  }
 0x1ce   :  { %181 = vsyncadd [#allocation3], 4294967280 }
 0x1cf   :  { %141 = sfence }
 0x1d0   :  { %142 = vsyncpa [#allocation3], 1 }

</bundles_post_ra>
